<compile_context>
chip_gen: v7x
topology: tpu7x:2x2x1
jax: 0.10.0
libtpu: 0.0.40
codegen_flags: <defaults>
</compile_context>

<pallas_src>
import jax
import jax.numpy as jnp
import numpy as np
from jax.experimental import pallas as pl
from jax.experimental.pallas import tpu as pltpu


def weighted_mse_kernel(gt_ref, net_ref, mask_ref, norms_ref):
    """One grid step processes TB batch images (channel 0 only).

    gt_ref / net_ref / mask_ref : (TB, 1, H, W) VMEM tiles
    norms_ref                   : (1, TB, H)   per-block row norms (lane axis = H)
    """
    gt = gt_ref[:, 0].astype(jnp.float32)    # (TB, H, W)
    no = net_ref[:, 0].astype(jnp.float32)
    mk = mask_ref[:, 0].astype(jnp.float32)

    diff = mk * (no - gt)                    # masked difference
    row_sq = jnp.sum(diff * diff, axis=-1)   # (TB, H): sum of squares along W
    norms_ref[0] = jnp.sqrt(row_sq)          # L2 norm per row (torch.linalg.norm dim=1)


def _choose_batch_tile(B, H, W, itemsize, budget_bytes=20 << 20):
    """Largest divisor of B whose tile footprint fits the VMEM budget.

    Footprint per image per step: 3 inputs x 2 pipeline buffers x H*W*itemsize
    plus ~3 f32 temporaries for the cast/diff/square intermediates.
    """
    per_image = H * W * (6 * itemsize + 3 * 4)
    tb_cap = max(1, min(B, budget_bytes // max(per_image, 1)))
    return max(d for d in range(1, tb_cap + 1) if B % d == 0)


def weighted_mse_loss(ground_truth, net_output, mask):
    B, C, H, W = ground_truth.shape
    itemsize = jnp.dtype(ground_truth.dtype).itemsize

    tb = _choose_batch_tile(B, H, W, itemsize)
    num_blocks = B // tb

    # Inputs: (TB, 1, H, W) tile; last two block dims equal the full array dims,
    # and the channel block index is pinned to 0 so only channel 0 leaves HBM.
    in_spec = pl.BlockSpec((tb, 1, H, W), lambda b: (b, 0, 0, 0))
    # Output: per-block (TB, H) row-norm slab -> lane-dense store, no cross-step
    # residency, so the batch axis can be "parallel" (megacore on v7x).
    out_spec = pl.BlockSpec((1, tb, H), lambda b: (b, 0, 0))

    cost = pl.CostEstimate(
        flops=5 * B * H * W,                              # sub, 2x mul, add, ...
        transcendentals=B * H,                            # sqrt per row
        bytes_accessed=3 * B * H * W * itemsize + B * H * 4,
    )

    row_norms = pl.pallas_call(
        weighted_mse_kernel,
        out_shape=jax.ShapeDtypeStruct((num_blocks, tb, H), jnp.float32),
        grid_spec=pltpu.PrefetchScalarGridSpec(
            num_scalar_prefetch=0,
            grid=(num_blocks,),
            in_specs=[in_spec, in_spec, in_spec],
            out_specs=out_spec,
        ),
        compiler_params=pltpu.CompilerParams(
            dimension_semantics=("parallel",),            # independent per-block writes
            vmem_limit_bytes=32 << 20,                    # v5e default is only 16 MiB
        ),
        cost_estimate=cost,
    )(ground_truth, net_output, mask)

    # Tiny final reduction (B*H scalars) in the wrapper: mean over all row norms.
    return jnp.sum(row_norms) / jnp.float32(B * H)


def _reference(ground_truth, net_output, mask):
    # Pure-JAX reference matching the PyTorch loop exactly.
    gt = ground_truth[:, 0].astype(jnp.float32)   # (B, H, W)
    no = net_output[:, 0].astype(jnp.float32)
    mk = mask[:, 0].astype(jnp.float32)
    diff = mk * (no - gt)
    norms = jnp.sqrt(jnp.sum(diff * diff, axis=-1))  # (B, H)
    return jnp.mean(norms)


if __name__ == "__main__":
    key = jax.random.PRNGKey(0)
    k1, k2, k3 = jax.random.split(key, 3)

    B, C, H, W = 2, 4, 16, 16
    ground_truth = jax.random.normal(k1, (B, C, H, W), dtype=jnp.float32)
    net_output = jax.random.normal(k2, (B, C, H, W), dtype=jnp.float32)
    # Binary-ish mask, deterministic.
    mask = (jax.random.uniform(k3, (B, C, H, W)) > 0.5).astype(jnp.float32)

    loss = weighted_mse_loss(ground_truth, net_output, mask)
    loss = jax.block_until_ready(loss)

    ref = jax.block_until_ready(_reference(ground_truth, net_output, mask))
    np.testing.assert_allclose(np.asarray(loss), np.asarray(ref), rtol=1e-5, atol=1e-5)

    print("KERNEL_OK")
</pallas_src>

<mosaic_0001>
module attributes {stable_mosaic.version = 11 : i64} {
  func.func @weighted_mse_kernel(%arg0: i32, %arg1: memref<2x1x16x16xf32, #tpu.memory_space<vmem>>, %arg2: memref<2x1x16x16xf32, #tpu.memory_space<vmem>>, %arg3: memref<2x1x16x16xf32, #tpu.memory_space<vmem>>, %arg4: memref<1x2x16xf32, #tpu.memory_space<vmem>>) attributes {dimension_semantics = [#tpu.dimension_semantics<parallel>], iteration_bounds = array<i64: 1>, scalar_prefetch = 0 : i64, scratch_operands = 0 : i64, tpu.core_type = #tpu.core_type<tc>, window_params = [{transform_indices = @transform_0, window_bounds = array<i64: 2, 1, 16, 16>}, {transform_indices = @transform_1, window_bounds = array<i64: 2, 1, 16, 16>}, {transform_indices = @transform_2, window_bounds = array<i64: 2, 1, 16, 16>}, {transform_indices = @transform_3, window_bounds = array<i64: 1, 2, 16>}]} {
    %c0 = arith.constant 0 : index
    %c0_0 = arith.constant 0 : index
    %c0_1 = arith.constant 0 : index
    %c0_2 = arith.constant 0 : index
    %0 = vector.load %arg1[%c0, %c0_0, %c0_1, %c0_2] : memref<2x1x16x16xf32, #tpu.memory_space<vmem>>, vector<2x1x16x16xf32>
    %1 = vector.shape_cast %0 : vector<2x1x16x16xf32> to vector<2x16x16xf32>
    %c0_3 = arith.constant 0 : index
    %c0_4 = arith.constant 0 : index
    %c0_5 = arith.constant 0 : index
    %c0_6 = arith.constant 0 : index
    %2 = vector.load %arg2[%c0_3, %c0_4, %c0_5, %c0_6] : memref<2x1x16x16xf32, #tpu.memory_space<vmem>>, vector<2x1x16x16xf32>
    %3 = vector.shape_cast %2 : vector<2x1x16x16xf32> to vector<2x16x16xf32>
    %c0_7 = arith.constant 0 : index
    %c0_8 = arith.constant 0 : index
    %c0_9 = arith.constant 0 : index
    %c0_10 = arith.constant 0 : index
    %4 = vector.load %arg3[%c0_7, %c0_8, %c0_9, %c0_10] : memref<2x1x16x16xf32, #tpu.memory_space<vmem>>, vector<2x1x16x16xf32>
    %5 = vector.shape_cast %4 : vector<2x1x16x16xf32> to vector<2x16x16xf32>
    %6 = arith.subf %3, %1 : vector<2x16x16xf32>
    %7 = arith.mulf %5, %6 : vector<2x16x16xf32>
    %8 = arith.mulf %7, %7 : vector<2x16x16xf32>
    %cst = arith.constant dense<0.000000e+00> : vector<2x16xf32>
    %9 = vector.multi_reduction <add>, %8, %cst [2] : vector<2x16x16xf32> to vector<2x16xf32>
    %10 = math.sqrt %9 : vector<2x16xf32>
    %c0_11 = arith.constant 0 : index
    %c0_12 = arith.constant 0 : index
    %c0_13 = arith.constant 0 : index
    %11 = vector.load %arg4[%c0_11, %c0_12, %c0_13] : memref<1x2x16xf32, #tpu.memory_space<vmem>>, vector<1x2x16xf32>
    %12 = vector.shape_cast %11 : vector<1x2x16xf32> to vector<2x16xf32>
    %13 = vector.shape_cast %10 : vector<2x16xf32> to vector<1x2x16xf32>
    tpu.vector_store %arg4[%c0_11, %c0_12, %c0_13], %13 {strides = array<i32>} : memref<1x2x16xf32, #tpu.memory_space<vmem>>, vector<1x2x16xf32>,
    return
  }
  func.func @transform_0(%arg0: i32) -> (i32, i32, i32, i32) {
    %c0_i32 = arith.constant 0 : i32
    %c0_i32_0 = arith.constant 0 : i32
    %c0_i32_1 = arith.constant 0 : i32
    %c0_i32_2 = arith.constant 0 : i32
    return %arg0, %c0_i32, %c0_i32_0, %c0_i32_1 : i32, i32, i32, i32
  }
  func.func @transform_1(%arg0: i32) -> (i32, i32, i32, i32) {
    %c0_i32 = arith.constant 0 : i32
    %c0_i32_0 = arith.constant 0 : i32
    %c0_i32_1 = arith.constant 0 : i32
    %c0_i32_2 = arith.constant 0 : i32
    return %arg0, %c0_i32, %c0_i32_0, %c0_i32_1 : i32, i32, i32, i32
  }
  func.func @transform_2(%arg0: i32) -> (i32, i32, i32, i32) {
    %c0_i32 = arith.constant 0 : i32
    %c0_i32_0 = arith.constant 0 : i32
    %c0_i32_1 = arith.constant 0 : i32
    %c0_i32_2 = arith.constant 0 : i32
    return %arg0, %c0_i32, %c0_i32_0, %c0_i32_1 : i32, i32, i32, i32
  }
  func.func @transform_3(%arg0: i32) -> (i32, i32, i32) {
    %c0_i32 = arith.constant 0 : i32
    %c0_i32_0 = arith.constant 0 : i32
    %c0_i32_1 = arith.constant 0 : i32
    return %arg0, %c0_i32, %c0_i32_0 : i32, i32, i32
  }
}

</mosaic_0001>

<bundles_post_ra>
// kernel: tpu_custom_call.1
= control target key start
LH: loop header
LB: loop body
LE: loop exit
PB: predicated region body
PF: predicated region fallthrough
CT: control target
= control target key end

     0   :  { %8 = vsyncpa [#allocation3], 0  ;;  %s376_s0 = inlined_call_operand.hbm [shape: f32[2,4,16,16], index: 0, kind: input, shape index: {}]   ;;  %s377_s1 = inlined_call_operand.hbm [shape: f32[2,4,16,16], index: 1, kind: input, shape index: {}]   ;;  %s378_s2 = inlined_call_operand.hbm [shape: f32[2,4,16,16], index: 2, kind: input, shape index: {}]   ;;  %s379_s3 = inlined_call_operand.hbm [shape: f32[1,2,16], index: 3, kind: output, shape index: {}]  }
   0x1   :  { %9 = vsyncpa [#allocation6], 0 }
   0x2   :  { %10 = vsyncpa [#allocation4], 0 }
   0x3   :  { %s20_s12 = sld [smem:[#allocation0]]   ;;  %s310_s13 = smov [#allocation2]  }
   0x4   :  { %s28_s14 = sshll.u32 %s310_s13, 4  ;;  %s311_s15 = smov 1024   ;;  %s29_s14 = int_to_ptr.vmem [resolvable:$true] %s28_s14 }
   0x5   :  { %35 = sst [smem:[#allocation10]] %s311_s15  ;;  %s312_s16 = smov 256  }
   0x6   :  { %37 = sst [smem:[#allocation10 + $0x1]] %s312_s16  ;;  %s313_s17 = smov 2  }
   0x7   :  { %39 = sst [smem:[#allocation10 + $0x2]] %s313_s17  ;;  %s314_s19 = smov 128  }
   0x8   :  { %41 = sst [smem:[#allocation10 + $0x3]] %s314_s19  ;;  %s315_s21 = smov 8  }
   0x9   :  { %s243_s18 = sshll.u32 %s20_s12, 26  ;;  %43 = sst [smem:[#allocation10 + $0x4]] %s314_s19 }
   0xa   :  { %s244_s20 = sadd.s32 134217728, %s243_s18  ;;  %45 = sst [smem:[#allocation10 + $0x5]] %s315_s21 }
   0xb   :  { %s316_s22 = smov [#allocation3]   ;;  %s317_s23 = smov [#allocation9]  }
   0xc   :  { %47 = dma.general %s376_s0, 512, %s29_s14, %s316_s22, %s317_s23, [#allocation10], %s244_s20, 0  }
   0xd   :  { %s57_s26 = sld [smem:[#allocation0]]   ;;  %s318_s27 = smov [#allocation5]  }
   0xe   :  { %s65_s28 = sshll.u32 %s318_s27, 4  ;;  %s319_s29 = smov 1024   ;;  %s66_s28 = int_to_ptr.vmem [resolvable:$true] %s65_s28 }
   0xf   :  { %72 = sst [smem:[#allocation12]] %s319_s29  ;;  %s320_s30 = smov 256  }
  0x10   :  { %74 = sst [smem:[#allocation12 + $0x1]] %s320_s30  ;;  %s321_s4 = smov 2  }
  0x11   :  { %76 = sst [smem:[#allocation12 + $0x2]] %s321_s4  ;;  %s322_s6 = smov 128  }
  0x12   :  { %78 = sst [smem:[#allocation12 + $0x3]] %s322_s6  ;;  %s323_s8 = smov 8  }
  0x13   :  { %s245_s5 = sshll.u32 %s57_s26, 26  ;;  %80 = sst [smem:[#allocation12 + $0x4]] %s322_s6 }
  0x14   :  { %s246_s7 = sadd.s32 134217728, %s245_s5  ;;  %82 = sst [smem:[#allocation12 + $0x5]] %s323_s8 }
  0x15   :  { %s324_s9 = smov [#allocation6]   ;;  %s325_s10 = smov [#allocation11]  }
  0x16   :  { %84 = dma.general %s377_s1, 512, %s66_s28, %s324_s9, %s325_s10, [#allocation12], %s246_s7, 0  }
  0x17   :  { %s94_s12 = sld [smem:[#allocation0]]   ;;  %s326_s13 = smov [#allocation7]  }
  0x18   :  { %s102_s14 = sshll.u32 %s326_s13, 4  ;;  %s327_s15 = smov 1024   ;;  %s103_s14 = int_to_ptr.vmem [resolvable:$true] %s102_s14 }
  0x19   :  { %109 = sst [smem:[#allocation14]] %s327_s15  ;;  %s328_s16 = smov 256  }
  0x1a   :  { %111 = sst [smem:[#allocation14 + $0x1]] %s328_s16  ;;  %s329_s17 = smov 2  }
  0x1b   :  { %113 = sst [smem:[#allocation14 + $0x2]] %s329_s17  ;;  %s330_s19 = smov 128  }
  0x1c   :  { %115 = sst [smem:[#allocation14 + $0x3]] %s330_s19  ;;  %s331_s21 = smov 8  }
  0x1d   :  { %s247_s18 = sshll.u32 %s94_s12, 26  ;;  %117 = sst [smem:[#allocation14 + $0x4]] %s330_s19 }
  0x1e   :  { %s248_s20 = sadd.s32 134217728, %s247_s18  ;;  %119 = sst [smem:[#allocation14 + $0x5]] %s331_s21 }
  0x1f   :  { %s332_s22 = smov [#allocation6]   ;;  %s333_s23 = smov [#allocation13]  }
  0x20   :  { %121 = dma.general %s378_s2, 512, %s103_s14, %s332_s22, %s333_s23, [#allocation14], %s248_s20, 0  }
  0x21   :  { %304 = dma.done.wait [#allocation3], 512  }
  0x22   :  { %305 = vsyncadd [#allocation3], 4294966784 }
  0x23   :  { %306 = dma.done.wait [#allocation6], 1024  }
  0x24   :  { %307 = vsyncadd [#allocation6], 4294966272  ;;  %v133_v0 = vld [vmem:[#allocation2 + $0x10] sm:$0xff]  ;;  %v131_v4 = vld [vmem:[#allocation2] sm:$0xff]  ;;  %vm155_vm0 = vcmask 130048   ;;  %v200_v32 = vlaneseq  ;;  %vm211_vm9 = vcmask 130112  }
  0x25   :  { %v137_v1 = vld [vmem:[#allocation5 + $0x10] sm:$0xff]  ;;  %v135_v5 = vld [vmem:[#allocation5] sm:$0xff]  ;;  %v134_v8 = vld [vmem:[#allocation2 + $0x18] sm:$0xff]  ;;  %s334_s2 = smov [#allocation8]   ;;  %vm222_vm10 = vcmask 1041409   ;;  %vm225_vm11 = vcmask 123904  }
  0x26   :  { %v141_v2 = vld [vmem:[#allocation7 + $0x10] sm:$0xff]  ;;  %v145_v3 = vsub.f32 %v137_v1, %v133_v0  ;;  %v139_v6 = vld [vmem:[#allocation7] sm:$0xff]  ;;  %v143_v7 = vsub.f32 %v135_v5, %v131_v4  ;;  %v138_v9 = vld [vmem:[#allocation5 + $0x18] sm:$0xff]  ;;  %v201_v33 = vand.u32 127, %v200_v32  ;;  %v203_v34 = vshrl.u32 %v200_v32, 7  ;;  %s233_s25 = sshll.u32 %s334_s2, 4  ;;  %s234_s25 = int_to_ptr.vmem [resolvable:$true] %s233_s25 }
  0x27   :  { %v142_v10 = vld [vmem:[#allocation7 + $0x18] sm:$0xff]  ;;  %v146_v12 = vsub.f32 %v138_v9, %v134_v8  ;;  %v132_v13 = vld [vmem:[#allocation2 + $0x8] sm:$0xff]  ;;  %s282_s26 = scalar_lea.vmem %s234_s25, 32  ;;  %p287_p1 = scmp.lt.s32.totalorder %s234_s25, %s234_s25 }
  0x28   :  { %v149_v11 = vmul.f32 %v145_v3, %v141_v2  ;;  %v136_v14 = vld [vmem:[#allocation5 + $0x8] sm:$0xff]  ;;  %v147_v16 = vmul.f32 %v143_v7, %v139_v6  ;;  %v206_v36 = vadd.s32 4294967288, %v201_v33  ;;  %v204_v41 = vsub.s32 %v201_v33, %v203_v34  ;;  %p283_p0 = scmp.ne.s32.totalorder %s234_s25, %s282_s26  ;;  %p288_p2 = scmp.lt.s32.totalorder %s282_s26, %s282_s26 }
  0x29   :  { %v140_v15 = vld [vmem:[#allocation7 + $0x8] sm:$0xff]  ;;  %v144_v17 = vsub.f32 %v136_v14, %v132_v13  ;;  %v150_v19 = vmul.f32 %v146_v12, %v142_v10 }
  0x2a   :  { %v153_v18 = vmul.f32 %v149_v11, %v149_v11  ;;  %v151_v20 = vmul.f32 %v147_v16, %v147_v16  ;;  %v209_v45 = vsub.s32 %v206_v36, %v203_v34  ;;  %p289_p3 = por %p288_p2, %p287_p1 }
  0x2b   :  { %v148_v21 = vmul.f32 %v144_v17, %v140_v15  ;;  %v154_v23 = vmul.f32 %v150_v19, %v150_v19 }
  0x2c   :  { %v162_v22 = vsel %vm155_vm0, %v153_v18, 0.0  ;;  %v156_v24 = vsel %vm155_vm0, %v151_v20, 0.0  ;;  %p290_p4 = pnand %p289_p3, %p283_p0 }
  0x2d   :  { %163 = vadd.xlane.f32.xlu1 %v162_v22  ;;  %v152_v25 = vmul.f32 %v148_v21, %v148_v21  ;;  %157 = vadd.xlane.f32.xlu0 %v156_v24  ;;  %v165_v26 = vsel %vm155_vm0, %v154_v23, 0.0 }
  0x2f   :  { %v159_v27 = vsel %vm155_vm0, %v152_v25, 0.0 }
  0x31   :  { %166 = vadd.xlane.f32.xlu1 %v165_v26  ;;  %160 = vadd.xlane.f32.xlu0 %v159_v27 }
  0xba   :  { %v164_v28 = vpop.xlane.xlu1 %163  ;;  %v158_v29 = vpop.xlane.xlu0 %157 }
  0xbb   :  { %274 = vrsqrt.f32 %v164_v28  ;;  %vm184_vm1 = vcmp.eq.f32.partialorder %v164_v28, inf  ;;  %vm170_vm2 = vcmp.eq.f32.partialorder %v158_v29, inf  ;;  %vm186_vm3 = vcmp.eq.f32.partialorder %v164_v28, 0.0 }
  0xbc   :  { %276 = vrsqrt.f32 %v158_v29  ;;  %v187_v43 = vand.u32 2147483648, %v164_v28  ;;  %vm172_vm4 = vcmp.eq.f32.partialorder %v158_v29, 0.0  ;;  %v173_v47 = vand.u32 2147483648, %v158_v29 }
  0xbe   :  { %v167_v30 = vpop.xlane.xlu1 %166  ;;  %v161_v31 = vpop.xlane.xlu0 %160 }
  0xbf   :  { %278 = vrsqrt.f32 %v167_v30  ;;  %vm191_vm5 = vcmp.eq.f32.partialorder %v167_v30, inf  ;;  %vm193_vm6 = vcmp.eq.f32.partialorder %v167_v30, 0.0  ;;  %v194_v49 = vand.u32 2147483648, %v167_v30 }
  0xc0   :  { %280 = vrsqrt.f32 %v161_v31  ;;  %vm177_vm7 = vcmp.eq.f32.partialorder %v161_v31, inf  ;;  %v180_v53 = vand.u32 2147483648, %v161_v31  ;;  %vm179_vm8 = vcmp.eq.f32.partialorder %v161_v31, 0.0 }
  0xc5   :  { %v275_v35 = vpop.eup %274 }
  0xc6   :  { %v277_v37 = vpop.eup %276  ;;  %v183_v38 = vmul.f32 %v275_v35, %v164_v28 }
  0xc7   :  { %v169_v39 = vmul.f32 %v277_v37, %v158_v29 }
  0xc8   :  { %v185_v40 = vsel %vm184_vm1, %v164_v28, %v183_v38 }
  0xc9   :  { %v279_v42 = vpop.eup %278  ;;  %v171_v44 = vsel %vm170_vm2, %v158_v29, %v169_v39  ;;  %v188_v51 = vsel %vm186_vm3, %v187_v43, %v185_v40 }
  0xca   :  { %v281_v46 = vpop.eup %280  ;;  %v190_v48 = vmul.f32 %v279_v42, %v167_v30  ;;  %v174_v54 = vsel %vm172_vm4, %v173_v47, %v171_v44  ;;  %v216_v58 = vrot.slane %v188_v51, %v204_v41 }
  0xcb   :  { %v176_v50 = vmul.f32 %v281_v46, %v161_v31  ;;  %v205_v60 = vrot.slane %v174_v54, %v204_v41 }
  0xcc   :  { %v192_v52 = vsel %vm191_vm5, %v167_v30, %v190_v48 }
  0xcd   :  { %v195_v55 = vsel %vm193_vm6, %v194_v49, %v192_v52  ;;  %v178_v56 = vsel %vm177_vm7, %v161_v31, %v176_v50 }
  0xce   :  { %v181_v57 = vsel %vm179_vm8, %v180_v53, %v178_v56  ;;  %v220_v59 = vrot.slane %v195_v55, %v209_v45 }
  0xcf   :  { %v210_v61 = vrot.slane %v181_v57, %v209_v45 }
  0xd0   :  { %v221_v62 = vsel %vm211_vm9, %v220_v59, %v216_v58 }
  0xd1   :  { %v212_v63 = vsel %vm211_vm9, %v210_v61, %v205_v60 }
  0xd2   :  { %v223_v0 = vsel %vm222_vm10, %v221_v62, %v212_v63 }
  0xd3   :  { %226 = vst.msk [vmem:[#allocation8] sm:$0x3] %vm225_vm11, %v223_v0 }
  0xd4   :  { %293 = shalt.err (!%p290_p4)
}
  0xd5   :  { %s294_s29 = scalar_lea.hbm %s379_s3, 32 }
  0xd6   :  { %p295_p5 = scmp.ne.s32.totalorder %s379_s3, %s294_s29  ;;  %p298_p6 = scmp.lt.u32.totalorder %s294_s29, %s379_s3 }
  0xd8   :  { %p300_p7 = pnand %p298_p6, %p295_p5 }
  0xda   :  { %303 = shalt.err (!%p300_p7)
}
  0xdb   :  { %236 = dma.vmem_to_hbm [thread:$0]  %s234_s25, 32, %s379_s3, [#allocation4]  }
  0xdc   :  { %308 = dma.done.wait [#allocation4], 32  }
  0xdd   :  { %309 = vsyncadd [#allocation4], 4294967264 }
  0xde   :  { %240 = vsyncpa [#allocation3], 1 }
  0xdf   :  { %241 = vsyncpa [#allocation6], 1 }
  0xe0   :  { %242 = vsyncpa [#allocation4], 1 }

</bundles_post_ra>
